<compile_context>
chip_gen: v6e
topology: v6e:2x2x1
jax: 0.10.0
libtpu: 0.0.40
codegen_flags: <defaults>
</compile_context>

<pallas_src>
import math

import jax
import jax.numpy as jnp
from jax import lax
from jax.experimental import pallas as pl
from jax.experimental.pallas import tpu as pltpu


_TARGET_OUT_BLOCK_BYTES = 4 * 1024 * 1024   # ~4 MiB blocks: near HBM roofline on
                                            # v5e/v6e, still inside v7x guidance
_MIN_TILE = 8                               # sublane granularity


def _round_up(x, m):
    return (x + m - 1) // m * m


def _pick_r(k):
    """Smallest super-row width R such that R*k is a multiple of 128 and R*k >= 512."""
    r = 128 // math.gcd(k, 128)   # minimal R making R*k lane-aligned
    while r * k < 512:            # keep output rows comfortably lane-dense
        r *= 2
    return r


def _time2vec_kernel(t_ref, sel_ref, w_ref, b_ref, mask_ref, o_ref):
    # t_ref   : [TILE, R]        lane-packed time values (R values per super-row)
    # sel_ref : [R, R*k]         one-hot "repeat each lane k times" matrix (resident)
    # w_ref   : [1, R*k]         fused periodic+linear weights, tiled per t-lane
    # b_ref   : [1, R*k]         fused periodic+linear biases
    # mask_ref: [1, R*k] int32   1 -> periodic lane (sin), 0 -> linear lane
    # o_ref   : [TILE, R*k]
    #
    # Exact lane-expansion of t on the otherwise-idle MXU.  sel is one-hot and
    # precision=HIGHEST pins the multi-pass f32 decomposition, so t_exp == t
    # bit-exactly (no bf16 rounding of t inside the expansion).
    t_exp = jnp.dot(t_ref[...], sel_ref[...],
                    precision=lax.Precision.HIGHEST,
                    preferred_element_type=jnp.float32)
    z = t_exp * w_ref[...] + b_ref[...]
    # The compare is on the single [1, R*k] parameter row; the broadcasted
    # select is one VALU op per output vreg (sin's polynomial dominates).
    o_ref[...] = jnp.where(mask_ref[...] != 0, jnp.sin(z), z)


def time2vec(t, w, b, w0, b0):
    """t: [..., 1] float32. w/b: [1, 1, k-1]. w0/b0: [1]. Returns [..., k] float32."""
    k_minus_1 = w.shape[-1]
    k = k_minus_1 + 1
    lead_shape = t.shape[:-1]
    n = math.prod(lead_shape) if lead_shape else 1

    r = _pick_r(k)
    rk = r * k

    # --- fused per-lane parameters, tiled to the regrouped lane layout [1, R*k] ---
    w_row = jnp.concatenate(
        [w.reshape(k_minus_1).astype(jnp.float32), w0.reshape(1).astype(jnp.float32)])
    b_row = jnp.concatenate(
        [b.reshape(k_minus_1).astype(jnp.float32), b0.reshape(1).astype(jnp.float32)])
    w_tiled = jnp.tile(w_row, r)[None, :]                          # [1, R*k]
    b_tiled = jnp.tile(b_row, r)[None, :]                          # [1, R*k]
    mask_row = jnp.concatenate(
        [jnp.ones((k_minus_1,), jnp.int32), jnp.zeros((1,), jnp.int32)])
    mask_tiled = jnp.tile(mask_row, r)[None, :]                    # [1, R*k]
    # sel[l, j] = 1 iff j // k == l  ->  t_exp[i, j] = t[i, j // k]
    sel = jnp.repeat(jnp.eye(r, dtype=jnp.float32), k, axis=1)     # [R, R*k]

    # --- regroup so both the t blocks and the output blocks are lane-dense ---
    super_rows = pl.cdiv(n, r)
    super_rows8 = _round_up(super_rows, _MIN_TILE)
    out_row_bytes = rk * 4
    tile_cap = max(_MIN_TILE,
                   (_TARGET_OUT_BLOCK_BYTES // out_row_bytes) // _MIN_TILE * _MIN_TILE)
    tile = min(tile_cap, super_rows8)
    # v7x megacore: if the whole problem would be a single grid step, split it
    # so dimension_semantics=("parallel",) has >=2 steps to shard across the
    # two TensorCores (harmless on single-core v5e/v6e).
    if super_rows8 > _MIN_TILE and super_rows8 // tile < 2:
        tile = max(_MIN_TILE, (super_rows8 // 2) // _MIN_TILE * _MIN_TILE)
    super_rows_pad = _round_up(super_rows8, tile)
    n_pad = super_rows_pad * r

    t_flat = t.reshape(n).astype(jnp.float32)
    t_flat = jnp.pad(t_flat, (0, n_pad - n))
    t_grouped = t_flat.reshape(super_rows_pad, r)

    grid = (super_rows_pad // tile,)
    out_rows = pl.pallas_call(
        _time2vec_kernel,
        out_shape=jax.ShapeDtypeStruct((super_rows_pad, rk), jnp.float32),
        grid=grid,
        in_specs=[
            pl.BlockSpec((tile, r), lambda i: (i, 0)),    # t: streamed per tile
            pl.BlockSpec((r, rk), lambda i: (0, 0)),      # sel: grid-invariant resident
            pl.BlockSpec((1, rk), lambda i: (0, 0)),      # w:   resident
            pl.BlockSpec((1, rk), lambda i: (0, 0)),      # b:   resident
            pl.BlockSpec((1, rk), lambda i: (0, 0)),      # mask: resident
        ],
        out_specs=pl.BlockSpec((tile, rk), lambda i: (i, 0)),
        compiler_params=pltpu.CompilerParams(
            dimension_semantics=("parallel",),
            vmem_limit_bytes=32 * 1024 * 1024),
    )(t_grouped, sel, w_tiled, b_tiled, mask_tiled)

    # Free reshapes: row-major [super_rows_pad, R*k] is byte-identical to [n_pad, k].
    return out_rows.reshape(n_pad, k)[:n].reshape(*lead_shape, k)


def time2vec_ref(t, w, b, w0, b0):
    periodic = jnp.sin(t * w + b)            # [..., k-1]
    linear = t * w0 + b0                     # [..., 1]
    return jnp.concatenate([periodic, linear], axis=-1)


if __name__ == "__main__":
    key = jax.random.PRNGKey(0)
    k_dim = 32
    batch, seq = 2, 8

    kw, kb, kw0, kb0, kt = jax.random.split(key, 5)
    # Parameter shapes mirror the nn.Module __init__ (torch.randn init).
    w = jax.random.normal(kw, (1, 1, k_dim - 1), dtype=jnp.float32)
    b = jax.random.normal(kb, (1, 1, k_dim - 1), dtype=jnp.float32)
    w0 = jax.random.normal(kw0, (1,), dtype=jnp.float32)
    b0 = jax.random.normal(kb0, (1,), dtype=jnp.float32)

    t = jax.random.normal(kt, (batch, seq, 1), dtype=jnp.float32)

    out = jax.block_until_ready(time2vec(t, w, b, w0, b0))
    ref = jax.block_until_ready(time2vec_ref(t, w, b, w0, b0))

    assert out.shape == (batch, seq, k_dim), out.shape
    assert jnp.allclose(out, ref, atol=1e-5, rtol=1e-5), float(jnp.max(jnp.abs(out - ref)))

    print("KERNEL_OK")
</pallas_src>

<mosaic_0001>
module attributes {stable_mosaic.version = 11 : i64} {
  func.func @_time2vec_kernel(%arg0: i32, %arg1: memref<8x16xf32, #tpu.memory_space<vmem>>, %arg2: memref<16x512xf32, #tpu.memory_space<vmem>>, %arg3: memref<1x512xf32, #tpu.memory_space<vmem>>, %arg4: memref<1x512xf32, #tpu.memory_space<vmem>>, %arg5: memref<1x512xi32, #tpu.memory_space<vmem>>, %arg6: memref<8x512xf32, #tpu.memory_space<vmem>>) attributes {dimension_semantics = [#tpu.dimension_semantics<parallel>], iteration_bounds = array<i64: 1>, scalar_prefetch = 0 : i64, scratch_operands = 0 : i64, tpu.core_type = #tpu.core_type<tc>, window_params = [{transform_indices = @transform_0, window_bounds = array<i64: 8, 16>}, {pipeline_mode = #tpu.pipeline_mode<synchronous>, transform_indices = @transform_1, window_bounds = array<i64: 16, 512>}, {pipeline_mode = #tpu.pipeline_mode<synchronous>, transform_indices = @transform_2, window_bounds = array<i64: 1, 512>}, {pipeline_mode = #tpu.pipeline_mode<synchronous>, transform_indices = @transform_3, window_bounds = array<i64: 1, 512>}, {pipeline_mode = #tpu.pipeline_mode<synchronous>, transform_indices = @transform_4, window_bounds = array<i64: 1, 512>}, {transform_indices = @transform_5, window_bounds = array<i64: 8, 512>}]} {
    %c0 = arith.constant 0 : index
    %c0_0 = arith.constant 0 : index
    %0 = vector.load %arg1[%c0, %c0_0] : memref<8x16xf32, #tpu.memory_space<vmem>>, vector<8x16xf32>
    %c0_1 = arith.constant 0 : index
    %c0_2 = arith.constant 0 : index
    %1 = vector.load %arg2[%c0_1, %c0_2] : memref<16x512xf32, #tpu.memory_space<vmem>>, vector<16x512xf32>
    %cst = arith.constant dense<0.000000e+00> : vector<8x512xf32>
    %2 = tpu.matmul %0, %1, %cst {dimension_numbers = #tpu.dot_dimension_numbers<[1], [0], [0], [1], [0, 0, 1, 1], [], []>, precision = #tpu.contract_precision<fp32>} : vector<8x16xf32>, vector<16x512xf32>, vector<8x512xf32> -> vector<8x512xf32>
    %c0_3 = arith.constant 0 : index
    %c0_4 = arith.constant 0 : index
    %3 = vector.load %arg3[%c0_3, %c0_4] : memref<1x512xf32, #tpu.memory_space<vmem>>, vector<1x512xf32>
    %4 = vector.broadcast %3 : vector<1x512xf32> to vector<8x512xf32>
    %5 = arith.mulf %2, %4 : vector<8x512xf32>
    %c0_5 = arith.constant 0 : index
    %c0_6 = arith.constant 0 : index
    %6 = vector.load %arg4[%c0_5, %c0_6] : memref<1x512xf32, #tpu.memory_space<vmem>>, vector<1x512xf32>
    %7 = vector.broadcast %6 : vector<1x512xf32> to vector<8x512xf32>
    %8 = arith.addf %5, %7 : vector<8x512xf32>
    %c0_7 = arith.constant 0 : index
    %c0_8 = arith.constant 0 : index
    %9 = vector.load %arg5[%c0_7, %c0_8] : memref<1x512xi32, #tpu.memory_space<vmem>>, vector<1x512xi32>
    %c0_i32 = arith.constant 0 : i32
    %10 = vector.broadcast %c0_i32 : i32 to vector<1x512xi32>
    %11 = arith.cmpi ne, %9, %10 : vector<1x512xi32>
    %12 = math.sin %8 : vector<8x512xf32>
    %13 = vector.shape_cast %11 : vector<1x512xi1> to vector<1x512xi1>
    %14 = vector.broadcast %13 : vector<1x512xi1> to vector<8x512xi1>
    %15 = arith.select %14, %12, %8 : vector<8x512xi1>, vector<8x512xf32>
    %c0_9 = arith.constant 0 : index
    %c0_10 = arith.constant 0 : index
    %16 = vector.load %arg6[%c0_9, %c0_10] : memref<8x512xf32, #tpu.memory_space<vmem>>, vector<8x512xf32>
    tpu.vector_store %arg6[%c0_9, %c0_10], %15 {strides = array<i32>} : memref<8x512xf32, #tpu.memory_space<vmem>>, vector<8x512xf32>,
    return
  }
  func.func @transform_0(%arg0: i32) -> (i32, i32) {
    %c0_i32 = arith.constant 0 : i32
    %c0_i32_0 = arith.constant 0 : i32
    return %arg0, %c0_i32 : i32, i32
  }
  func.func @transform_1(%arg0: i32) -> (i32, i32) {
    %c0_i32 = arith.constant 0 : i32
    %c0_i32_0 = arith.constant 0 : i32
    %c0_i32_1 = arith.constant 0 : i32
    return %c0_i32, %c0_i32_0 : i32, i32
  }
  func.func @transform_2(%arg0: i32) -> (i32, i32) {
    %c0_i32 = arith.constant 0 : i32
    %c0_i32_0 = arith.constant 0 : i32
    %c0_i32_1 = arith.constant 0 : i32
    return %c0_i32, %c0_i32_0 : i32, i32
  }
  func.func @transform_3(%arg0: i32) -> (i32, i32) {
    %c0_i32 = arith.constant 0 : i32
    %c0_i32_0 = arith.constant 0 : i32
    %c0_i32_1 = arith.constant 0 : i32
    return %c0_i32, %c0_i32_0 : i32, i32
  }
  func.func @transform_4(%arg0: i32) -> (i32, i32) {
    %c0_i32 = arith.constant 0 : i32
    %c0_i32_0 = arith.constant 0 : i32
    %c0_i32_1 = arith.constant 0 : i32
    return %c0_i32, %c0_i32_0 : i32, i32
  }
  func.func @transform_5(%arg0: i32) -> (i32, i32) {
    %c0_i32 = arith.constant 0 : i32
    %c0_i32_0 = arith.constant 0 : i32
    return %arg0, %c0_i32 : i32, i32
  }
}

</mosaic_0001>

<bundles_post_ra>
// kernel: tpu_custom_call.1
= control target key start
LH: loop header
LB: loop body
LE: loop exit
PB: predicated region body
PF: predicated region fallthrough
CT: control target
= control target key end

     0   :  { %10 = vsyncpa [#allocation3], 0  ;;  %s2228_s0 = inlined_call_operand.hbm [shape: f32[8,16], index: 0, kind: input, shape index: {}]   ;;  %s2229_s1 = inlined_call_operand.hbm [shape: f32[16,512], index: 1, kind: input, shape index: {}]   ;;  %s2230_s2 = inlined_call_operand.hbm [shape: f32[1,512], index: 2, kind: input, shape index: {}]   ;;  %s2231_s3 = inlined_call_operand.vmem [shape: f32[1,512], index: 3, kind: input, shape index: {}]   ;;  %s2232_s4 = inlined_call_operand.hbm [shape: s32[1,512], index: 4, kind: input, shape index: {}]   ;;  %s2233_s5 = inlined_call_operand.hbm [shape: f32[8,512], index: 5, kind: output, shape index: {}]  }
   0x1   :  { %11 = vsyncpa [#allocation6], 0 }
   0x2   :  { %12 = vsyncpa [#allocation9], 0 }
   0x3   :  { %13 = vsyncpa [#allocation4], 0  ;;  %s1752_s18 = smov [#allocation5]  }
   0x4   :  { %s29_s19 = sshll.u32 %s1752_s18, 4  ;;  %s30_s19 = int_to_ptr.vmem [resolvable:$true] %s29_s19 }
   0x5   :  { %s1652_s20 = scalar_lea.vmem %s30_s19, 1024  ;;  %p1657_p1 = scmp.lt.s32.totalorder %s30_s19, %s30_s19 }
   0x6   :  { %p1653_p0 = scmp.ne.s32.totalorder %s30_s19, %s1652_s20  ;;  %p1658_p2 = scmp.lt.s32.totalorder %s1652_s20, %s1652_s20 }
   0x8   :  { %p1659_p3 = por %p1658_p2, %p1657_p1 }
   0xa   :  { %p1660_p4 = pnand %p1659_p3, %p1653_p0 }
   0xc   :  { %1663 = shalt.err (!%p1660_p4)
}
   0xd   :  { %s1753_s21 = smov 512   ;;  %s1754_s22 = smov 32  }
   0xe   :  { %35 = dma.hbm_to_vmem [thread:$0]  %s2229_s1, 1024, %s30_s19, [#allocation6], %s1753_s21, %s1753_s21, %s1754_s22  }
   0xf   :  { %s1755_s25 = smov [#allocation2]   ;;  %s1756_s27 = smov [#allocation7]  }
  0x10   :  { %s20_s26 = sshll.u32 %s1755_s25, 4  ;;  %s42_s28 = sshll.u32 %s1756_s27, 4  ;;  %s21_s26 = int_to_ptr.vmem [resolvable:$true] %s20_s26  ;;  %s43_s28 = int_to_ptr.vmem [resolvable:$true] %s42_s28 }
  0x11   :  { %s1672_s29 = scalar_lea.vmem %s21_s26, 128  ;;  %p1677_p6 = scmp.lt.s32.totalorder %s21_s26, %s21_s26 }
  0x12   :  { %p1673_p5 = scmp.ne.s32.totalorder %s21_s26, %s1672_s29  ;;  %p1678_p7 = scmp.lt.s32.totalorder %s1672_s29, %s1672_s29 }
  0x14   :  { %p1679_p8 = por %p1678_p7, %p1677_p6 }
  0x16   :  { %p1680_p9 = pnand %p1679_p8, %p1673_p5 }
  0x18   :  { %1683 = shalt.err (!%p1680_p9)
}
  0x19   :  { %23 = dma.hbm_to_vmem [thread:$0]  %s2228_s0, 128, %s21_s26, [#allocation3]  }
  0x1a   :  { %s1692_s7 = scalar_lea.vmem %s43_s28, 64  ;;  %p1697_p11 = scmp.lt.s32.totalorder %s43_s28, %s43_s28 }
  0x1b   :  { %p1693_p10 = scmp.ne.s32.totalorder %s43_s28, %s1692_s7  ;;  %p1698_p12 = scmp.lt.s32.totalorder %s1692_s7, %s1692_s7 }
  0x1d   :  { %p1699_p13 = por %p1698_p12, %p1697_p11 }
  0x1f   :  { %p1700_p0 = pnand %p1699_p13, %p1693_p10 }
  0x21   :  { %1703 = shalt.err (!%p1700_p0)
}
  0x22   :  { %45 = dma.hbm_to_vmem [thread:$0]  %s2230_s2, 64, %s43_s28, [#allocation6]  }
  0x23   :  { %s1757_s9 = smov [#allocation8]  }
  0x24   :  { %s54_s10 = sshll.u32 %s1757_s9, 4  ;;  %s55_s10 = int_to_ptr.vmem [resolvable:$true] %s54_s10 }
  0x25   :  { %s1712_s11 = scalar_lea.vmem %s55_s10, 64  ;;  %p1717_p2 = scmp.lt.s32.totalorder %s55_s10, %s55_s10 }
  0x26   :  { %p1713_p1 = scmp.ne.s32.totalorder %s55_s10, %s1712_s11  ;;  %p1718_p3 = scmp.lt.s32.totalorder %s1712_s11, %s1712_s11 }
  0x28   :  { %p1719_p4 = por %p1718_p3, %p1717_p2 }
  0x2a   :  { %p1720_p5 = pnand %p1719_p4, %p1713_p1 }
  0x2c   :  { %1723 = shalt.err (!%p1720_p5)
}
  0x2d   :  { %57 = dma.hbm_to_vmem [thread:$0]  %s2232_s4, 64, %s55_s10, [#allocation9]  }
  0x2e   :  { %1744 = dma.done.wait [#allocation3], 128  }
  0x2f   :  { %1745 = vsyncadd [#allocation3], 4294967168 }
  0x30   :  { %1746 = dma.done.wait [#allocation6], 1088  }
  0x31   :  { %1747 = vsyncadd [#allocation6], 4294966208 }
  0x32   :  { %1748 = dma.done.wait [#allocation9], 64  }
  0x33   :  { %1749 = vsyncadd [#allocation9], 4294967232  ;;  %v1758_v0 = vmov 0.0   ;;  %vm79_vm0 = vcmask 130048   ;;  %v76_v1 = vld [vmem:[#allocation5 + $0x28] sm:$0xff]  ;;  %v75_v2 = vld [vmem:[#allocation5 + $0x20] sm:$0xff]  ;;  %v1067_v57 = vlaneseq }
  0x34   :  { %151 = vmatprep.mubr.f32.mxu0 %v1758_v0  ;;  %247 = vmatprep.mubr.f32.mxu1 %v1758_v0  ;;  %v72_v3 = vld [vmem:[#allocation5 + $0x8] sm:$0xff]  ;;  %v1811_v4 = vand.u32 4294901760, %v76_v1  ;;  %v1813_v5 = vand.u32 4294901760, %v75_v2  ;;  %v71_v7 = vld [vmem:[#allocation5] sm:$0xff]  ;;  %v70_v8 = vld [vmem:[#allocation2] sm:$0xff] }
  0x35   :  { %v1815_v6 = vand.u32 4294901760, %v72_v3  ;;  %v1817_v9 = vand.u32 4294901760, %v71_v7  ;;  %v81_v10 = vsel %vm79_vm0, %v70_v8, 0  ;;  %v78_v20 = vld [vmem:[#allocation5 + $0x38] sm:$0xff]  ;;  %v77_v26 = vld [vmem:[#allocation5 + $0x30] sm:$0xff] }
  0x36   :  { %112 = vmatprep.subr.mxu0 %v1811_v4  ;;  %v192_v11 = vsub.f32 %v76_v1, %v1811_v4  ;;  %v1821_v12 = vand.u32 4294901760, %v81_v10  ;;  %v198_v13 = vsub.f32 %v75_v2, %v1813_v5  ;;  %v1835_v28 = vand.u32 4294901760, %v78_v20  ;;  %v74_v29 = vld [vmem:[#allocation5 + $0x18] sm:$0xff]  ;;  %v73_v34 = vld [vmem:[#allocation5 + $0x10] sm:$0xff] }
  0x37   :  { %v204_v14 = vsub.f32 %v72_v3, %v1815_v6  ;;  %114 = vmatpush1.msra.mxu0 %v1813_v5  ;;  %v210_v15 = vsub.f32 %v71_v7, %v1817_v9  ;;  %v1839_v36 = vand.u32 4294901760, %v77_v26  ;;  %v1841_v38 = vand.u32 4294901760, %v74_v29 }
  0x38   :  { %116 = vmatprep.subr.mxu0 %v1815_v6  ;;  %v193_v16 = vand.u32 4294901760, %v192_v11  ;;  %v1829_v17 = vsub.f32 %v81_v10, %v1821_v12  ;;  %v199_v18 = vand.u32 4294901760, %v198_v13  ;;  %v1843_v39 = vand.u32 4294901760, %v73_v34 }
  0x39   :  { %v205_v19 = vand.u32 4294901760, %v204_v14  ;;  %118 = vmatpush1.msra.mxu0 %v1817_v9  ;;  %v211_v21 = vand.u32 4294901760, %v210_v15  ;;  %v683_v40 = vsub.f32 %v78_v20, %v1835_v28  ;;  %v689_v41 = vsub.f32 %v77_v26, %v1839_v36 }
  0x3a   :  { %v194_v22 = vsub.f32 %v192_v11, %v193_v16  ;;  %v1833_v23 = vand.u32 4294901760, %v1829_v17  ;;  %v200_v24 = vsub.f32 %v198_v13, %v199_v18  ;;  %285 = vmatprep.subr.mxu0 %v192_v11  ;;  %v695_v42 = vsub.f32 %v74_v29, %v1841_v38 }
  0x3b   :  { %v206_v25 = vsub.f32 %v204_v14, %v205_v19  ;;  %v212_v27 = vsub.f32 %v210_v15, %v211_v21  ;;  %v701_v43 = vsub.f32 %v73_v34, %v1843_v39  ;;  %v684_v44 = vand.u32 4294901760, %v683_v40 }
  0x3c   :  { %v195_v30 = vand.u32 4294901760, %v194_v22  ;;  %v155_v31 = vsub.f32 %v1829_v17, %v1833_v23  ;;  %v201_v32 = vand.u32 4294901760, %v200_v24  ;;  %v690_v45 = vand.u32 4294901760, %v689_v41 }
  0x3d   :  { %v207_v33 = vand.u32 4294901760, %v206_v25  ;;  %v213_v35 = vand.u32 4294901760, %v212_v27  ;;  %v696_v46 = vand.u32 4294901760, %v695_v42  ;;  %v702_v47 = vand.u32 4294901760, %v701_v43 }
  0x3e   :  { %196 = vmatprep.subr.mxu1 %v195_v30  ;;  %v156_v37 = vand.u32 4294901760, %v155_v31  ;;  %v685_v48 = vsub.f32 %v683_v40, %v684_v44  ;;  %v691_v49 = vsub.f32 %v689_v41, %v690_v45  ;;  %v1068_v2 = vshrl.u32 %v1067_v57, 7 }
  0x3f   :  { %202 = vmatpush1.msra.mxu1 %v201_v32  ;;  %v697_v50 = vsub.f32 %v695_v42, %v696_v46  ;;  %v703_v51 = vsub.f32 %v701_v43, %v702_v47 }
  0x40   :  { %157 = vmatmul.mubr.f32.vlgmr.msra.gmra.mxu0 %v156_v37  ;;  %208 = vmatprep.subr.mxu1 %v207_v33  ;;  %v686_v52 = vand.u32 4294901760, %v685_v48  ;;  %v692_v53 = vand.u32 4294901760, %v691_v49 }
  0x41   :  { %288 = vmatpush1.msra.mxu0 %v198_v13  ;;  %214 = vmatpush1.msra.mxu1 %v213_v35  ;;  %v698_v54 = vand.u32 4294901760, %v697_v50  ;;  %v704_v55 = vand.u32 4294901760, %v703_v51 }
  0x42   :  { %291 = vmatprep.subr.mxu0 %v204_v14  ;;  %249 = vmatmul.mubr.f32.vlgmr.msra.gmra.mxu1 %v1821_v12  ;;  %v1898_v14 = vld [vmem:[%s2231_s3] sm:$0xf]  ;;  %s1766_s3 = smov [#allocation10]  }
  0x43   :  { %294 = vmatpush1.msra.mxu0 %v210_v15  ;;  %327 = vmatprep.mubr.f32.mxu0 %v1758_v0  ;;  %s1570_s13 = sshll.u32 %s1766_s3, 4  ;;  %s1571_s13 = int_to_ptr.vmem [resolvable:$true] %s1570_s13 }
  0x44   :  { %365 = vmatprep.subr.mxu1 %v1811_v4  ;;  %330 = vmatmul.mubr.f32.vlgmr.msra.gmra.mxu0 %v1829_v17  ;;  %s1724_s14 = scalar_lea.vmem %s1571_s13, 512  ;;  %p1729_p7 = scmp.lt.s32.totalorder %s1571_s13, %s1571_s13 }
  0x45   :  { %367 = vmatpush1.msra.mxu1 %v1813_v5  ;;  %445 = vmatprep.subr.mxu0 %v193_v16  ;;  %p1725_p6 = scmp.ne.s32.totalorder %s1571_s13, %s1724_s14  ;;  %p1730_p8 = scmp.lt.s32.totalorder %s1724_s14, %s1724_s14 }
  0x46   :  { %369 = vmatprep.subr.mxu1 %v1815_v6  ;;  %449 = vmatpush1.msra.mxu0 %v199_v18 }
  0x47   :  { %371 = vmatpush1.msra.mxu1 %v1817_v9  ;;  %404 = vmatprep.mubr.f32.mxu1 %v1758_v0  ;;  %p1731_p9 = por %p1730_p8, %p1729_p7 }
  0x48   :  { %453 = vmatprep.subr.mxu0 %v205_v19  ;;  %408 = vmatmul.mubr.f32.vlgmr.msra.gmra.mxu1 %v1833_v23 }
  0x49   :  { %457 = vmatpush1.msra.mxu0 %v211_v21  ;;  %490 = vmatprep.mubr.f32.mxu0 %v1758_v0  ;;  %p1732_p10 = pnand %p1731_p9, %p1725_p6 }
  0x4a   :  { %527 = vmatprep.subr.mxu1 %v1811_v4  ;;  %492 = vmatmul.mubr.f32.vlgmr.msra.gmra.mxu0 %v1821_v12 }
  0x4b   :  { %529 = vmatpush1.msra.mxu1 %v1813_v5  ;;  %603 = vmatprep.subr.mxu0 %v1835_v28 }
  0x4c   :  { %531 = vmatprep.subr.mxu1 %v1815_v6  ;;  %605 = vmatpush1.msra.mxu0 %v1839_v36  ;;  %v1889_v6 = vsub.s32 0, %v1068_v2 }
  0x4d   :  { %533 = vmatpush1.msra.mxu1 %v1817_v9  ;;  %566 = vmatprep.mubr.f32.mxu1 %v1758_v0  ;;  %v1891_v9 = vld [vmem:[#allocation7] sm:$0xf] }
  0x4e   :  { %607 = vmatprep.subr.mxu0 %v1841_v38  ;;  %568 = vmatmul.mubr.f32.vlgmr.msra.gmra.mxu1 %v1821_v12  ;;  %v1070_v16 = vrot.slane %v1891_v9, %v1889_v6  ;;  %v1096_v19 = vrot.slane %v1898_v14, %v1889_v6 }
  0x4f   :  { %609 = vmatpush1.msra.mxu0 %v1843_v39  ;;  %642 = vmatprep.mubr.f32.mxu0 %v1758_v0 }
  0x50   :  { %687 = vmatprep.subr.mxu1 %v686_v52  ;;  %648 = vmatmul.mubr.f32.vlgmr.msra.gmra.mxu0 %v156_v37 }
  0x51   :  { %693 = vmatpush1.msra.mxu1 %v692_v53  ;;  %776 = vmatprep.subr.mxu0 %v683_v40 }
  0x52   :  { %699 = vmatprep.subr.mxu1 %v698_v54  ;;  %779 = vmatpush1.msra.mxu0 %v689_v41 }
  0x53   :  { %705 = vmatpush1.msra.mxu1 %v704_v55  ;;  %738 = vmatprep.mubr.f32.mxu1 %v1758_v0 }
  0x54   :  { %782 = vmatprep.subr.mxu0 %v695_v42  ;;  %740 = vmatmul.mubr.f32.vlgmr.msra.gmra.mxu1 %v1821_v12 }
  0x55   :  { %785 = vmatpush1.msra.mxu0 %v701_v43  ;;  %818 = vmatprep.mubr.f32.mxu0 %v1758_v0 }
  0x56   :  { %856 = vmatprep.subr.mxu1 %v1835_v28  ;;  %821 = vmatmul.mubr.f32.vlgmr.msra.gmra.mxu0 %v1829_v17 }
  0x57   :  { %858 = vmatpush1.msra.mxu1 %v1839_v36  ;;  %936 = vmatprep.subr.mxu0 %v684_v44 }
  0x58   :  { %860 = vmatprep.subr.mxu1 %v1841_v38  ;;  %940 = vmatpush1.msra.mxu0 %v690_v45 }
  0x59   :  { %862 = vmatpush1.msra.mxu1 %v1843_v39  ;;  %895 = vmatprep.mubr.f32.mxu1 %v1758_v0 }
  0x5a   :  { %944 = vmatprep.subr.mxu0 %v696_v46  ;;  %899 = vmatmul.mubr.f32.vlgmr.msra.gmra.mxu1 %v1833_v23 }
  0x5b   :  { %948 = vmatpush1.msra.mxu0 %v702_v47  ;;  %981 = vmatprep.mubr.f32.mxu0 %v1758_v0  ;;  %v1920_v47 = vsub.s32 2, %v1068_v2 }
  0x5c   :  { %1018 = vmatprep.subr.mxu1 %v1835_v28  ;;  %983 = vmatmul.mubr.f32.vlgmr.msra.gmra.mxu0 %v1821_v12 }
  0x5d   :  { %1020 = vmatpush1.msra.mxu1 %v1839_v36  ;;  %1057 = vmatprep.mubr.f32.mxu1 %v1758_v0 }
  0x5e   :  { %1022 = vmatprep.subr.mxu1 %v1841_v38 }
  0x5f   :  { %1024 = vmatpush1.msra.mxu1 %v1843_v39 }
  0x60   :  { %1059 = vmatmul.mubr.f32.vlgmr.msra.gmra.mxu1 %v1821_v12  ;;  %v1893_v12 = vsub.s32 1, %v1068_v2 }
  0x62   :  { %v1074_v20 = vrot.slane %v1891_v9, %v1893_v12  ;;  %v1100_v25 = vrot.slane %v1898_v14, %v1893_v12 }
 0x100   :  { %v158_v56 = vpop.f32.mrf.mxu0 }
 0x102   :  { %v160_v58 = vpop.f32.mrf.mxu0  ;;  %v250_v59 = vpop.f32.mrf.mxu1 }
 0x103   :  { %v251_v60 = vadd.f32 %v250_v59, %v158_v56 }
 0x104   :  { %v331_v61 = vpop.f32.mrf.mxu0  ;;  %v252_v62 = vpop.f32.mrf.mxu1 }
 0x105   :  { %v332_v63 = vadd.f32 %v331_v61, %v251_v60  ;;  %v253_v1 = vadd.f32 %v252_v62, %v160_v58  ;;  %v1078_v58 = vrot.slane %v1891_v9, %v1920_v47  ;;  %v1104_v61 = vrot.slane %v1898_v14, %v1920_v47 }
 0x106   :  { %v333_v3 = vpop.f32.mrf.mxu0  ;;  %v1926_v62 = vsub.s32 3, %v1068_v2  ;;  %v1762_v2 = vmov 2102212464  }
 0x107   :  { %v334_v4 = vadd.f32 %v333_v3, %v253_v1 }
 0x108   :  { %v409_v5 = vpop.f32.mrf.mxu1 }
 0x109   :  { %v410_v0 = vadd.f32 %v409_v5, %v332_v63 }
 0x10a   :  { %v493_v7 = vpop.f32.mrf.mxu0  ;;  %v411_v8 = vpop.f32.mrf.mxu1 }
 0x10b   :  { %v494_v10 = vadd.f32 %v493_v7, %v410_v0  ;;  %v412_v11 = vadd.f32 %v411_v8, %v334_v4  ;;  %v1759_v0 = vmov 683565275   ;;  %v1760_v8 = vmov 2475754826  }
 0x10c   :  { %v495_v13 = vpop.f32.mrf.mxu0 }
 0x10d   :  { %v496_v15 = vadd.f32 %v495_v13, %v412_v11  ;;  %v1761_v11 = vmov 2131351028  }
 0x10e   :  { %v569_v17 = vpop.f32.mrf.mxu1 }
 0x10f   :  { %v570_v18 = vadd.f32 %v569_v17, %v494_v10 }
 0x110   :  { %v649_v21 = vpop.f32.mrf.mxu0  ;;  %v571_v22 = vpop.f32.mrf.mxu1 }
 0x111   :  { %v1087_v23 = vmul.f32 %v1070_v16, %v570_v18  ;;  %v572_v24 = vadd.f32 %v571_v22, %v496_v15  ;;  %v1763_v16 = vmov 920167782  }
 0x112   :  { %v651_v26 = vpop.f32.mrf.mxu0 }
 0x113   :  { %v1908_v27 = vadd.f32 %v1096_v19, %v1087_v23  ;;  %v1088_v28 = vmul.f32 %v1074_v20, %v572_v24  ;;  %v1764_v23 = vmov 1326507024  }
 0x114   :  { %v741_v29 = vpop.f32.mrf.mxu1 }
 0x115   :  { %v1119_v30 = vand.u32 2147483647, %v1908_v27  ;;  %v1122_v31 = vand.u32 2139095040, %v1908_v27  ;;  %v1912_v32 = vadd.f32 %v1100_v25, %v1088_v28  ;;  %v742_v33 = vadd.f32 %v741_v29, %v649_v21 }
 0x116   :  { %v822_v34 = vpop.f32.mrf.mxu0  ;;  %v743_v35 = vpop.f32.mrf.mxu1  ;;  %vm1121_vm13 = vcmp.lt.s32.totalorder %v1908_v27, 0 }
 0x117   :  { %v1123_v36 = vshrl.u32 %v1122_v31, 23  ;;  %v1126_v37 = vand.u32 8388607, %v1119_v30  ;;  %v1223_v38 = vand.u32 2147483647, %v1912_v32  ;;  %v1226_v39 = vand.u32 2139095040, %v1912_v32 }
 0x118   :  { %v823_v40 = vadd.f32 %v822_v34, %v742_v33  ;;  %v744_v41 = vadd.f32 %v743_v35, %v651_v26  ;;  %v824_v44 = vpop.f32.mrf.mxu0 }
 0x119   :  { %v1581_v42 = vadd.s32 4294967169, %v1123_v36  ;;  %v1230_v43 = vand.u32 8388607, %v1223_v38  ;;  %v1227_v45 = vshrl.u32 %v1226_v39, 23  ;;  %v1127_v48 = vor.u32 8388608, %v1126_v37 }
 0x11a   :  { %v900_v46 = vpop.f32.mrf.mxu1  ;;  %v825_v52 = vadd.f32 %v824_v44, %v744_v41 }
 0x11b   :  { %v1129_v49 = vadd.s32 1, %v1581_v42  ;;  %v1585_v50 = vadd.s32 4294967169, %v1227_v45  ;;  %v1231_v51 = vor.u32 8388608, %v1230_v43  ;;  %v901_v53 = vadd.f32 %v900_v46, %v823_v40 }
 0x11c   :  { %v984_v54 = vpop.f32.mrf.mxu0  ;;  %v902_v55 = vpop.f32.mrf.mxu1  ;;  %v1928_v63 = vshll.u32 %v1127_v48, 8 }
 0x11d   :  { %vm1130_vm1 = vcmp.gt.s32.totalorder %v1129_v49, 0  ;;  %v1233_v57 = vadd.s32 1, %v1585_v50  ;;  %v1930_v1 = vshll.u32 %v1231_v51, 8  ;;  %v1932_v3 = vadd.f32 %v984_v54, %v901_v53 }
 0x11e   :  { %v1131_v56 = vsel %vm1130_vm1, %v1129_v49, 0  ;;  %v903_v4 = vadd.f32 %v902_v55, %v825_v52  ;;  %v986_v35 = vpop.f32.mrf.mxu0 }
 0x11f   :  { %v1132_v59 = vshrl.u32 %v1131_v56, 5  ;;  %v1133_v60 = vand.u32 31, %v1131_v56  ;;  %vm1234_vm2 = vcmp.gt.s32.totalorder %v1233_v57, 0 }
 0x120   :  { %v1235_v29 = vsel %vm1234_vm2, %v1233_v57, 0  ;;  %v987_v49 = vadd.f32 %v986_v35, %v903_v4 }
 0x121   :  { %v1134_v5 = vsub.s32 32, %v1133_v60  ;;  %v1136_v7 = vshll.u32 %v1759_v0, %v1133_v60  ;;  %v1139_v10 = vshll.u32 %v1760_v8, %v1133_v60  ;;  %v1142_v13 = vshll.u32 %v1761_v11, %v1133_v60 }
 0x122   :  { %v1145_v15 = vshll.u32 %v1762_v2, %v1133_v60  ;;  %v1148_v17 = vshll.u32 %v1763_v16, %v1133_v60  ;;  %vm1151_vm3 = vcmp.lt.s32.totalorder %v1132_v59, 1  ;;  %vm1152_vm4 = vcmp.lt.s32.totalorder %v1132_v59, 2 }
 0x123   :  { %v1137_v18 = vshrl.u32 %v1760_v8, %v1134_v5  ;;  %v1140_v19 = vshrl.u32 %v1761_v11, %v1134_v5  ;;  %v1143_v20 = vshrl.u32 %v1762_v2, %v1134_v5  ;;  %v1135_v21 = vshrl.u32 %v1759_v0, %v1134_v5 }
 0x124   :  { %v1146_v22 = vshrl.u32 %v1763_v16, %v1134_v5  ;;  %v1149_v24 = vshrl.u32 %v1764_v23, %v1134_v5  ;;  %vm1153_vm5 = vcmp.lt.s32.totalorder %v1132_v59, 3  ;;  %vm1154_vm6 = vcmp.lt.s32.totalorder %v1132_v59, 4 }
 0x125   :  { %v1138_v25 = vor.u32 %v1137_v18, %v1136_v7  ;;  %v1141_v26 = vor.u32 %v1140_v19, %v1139_v10  ;;  %v1144_v28 = vor.u32 %v1143_v20, %v1142_v13  ;;  %v1237_v34 = vand.u32 31, %v1235_v29 }
 0x126   :  { %v1147_v31 = vor.u32 %v1146_v22, %v1145_v15  ;;  %v1150_v33 = vor.u32 %v1149_v24, %v1148_v17  ;;  %v1236_v52 = vshrl.u32 %v1235_v29, 5 }
 0x127   :  { %v1155_v36 = vsel %vm1151_vm3, %v1135_v21, %v1138_v25  ;;  %v1156_v37 = vsel %vm1154_vm6, %v1144_v28, 2102212464  ;;  %v1159_v39 = vsel %vm1151_vm3, %v1138_v25, %v1141_v26  ;;  %v1163_v40 = vsel %vm1151_vm3, %v1141_v26, %v1144_v28 }
 0x128   :  { %v1157_v41 = vsel %vm1153_vm5, %v1141_v26, %v1156_v37  ;;  %v1160_v42 = vsel %vm1154_vm6, %v1147_v31, 920167782  ;;  %v1164_v43 = vsel %vm1154_vm6, %v1150_v33, 1326507024  ;;  %v1238_v44 = vsub.s32 32, %v1237_v34  ;;  %v1060_v26 = vpop.f32.mrf.mxu1 }
 0x129   :  { %v1158_v45 = vsel %vm1152_vm4, %v1155_v36, %v1157_v41  ;;  %v1161_v46 = vsel %vm1153_vm5, %v1144_v28, %v1160_v42  ;;  %v1165_v48 = vsel %vm1153_vm5, %v1147_v31, %v1164_v43  ;;  %v1240_v53 = vshll.u32 %v1759_v0, %v1237_v34 }
 0x12a   :  { %v1162_v50 = vsel %vm1152_vm4, %v1159_v39, %v1161_v46  ;;  %v1166_v51 = vsel %vm1152_vm4, %v1163_v40, %v1165_v48  ;;  %v1174_v60 = vmul.u32 %v1928_v63, %v1158_v45  ;;  %v1241_v4 = vshrl.u32 %v1760_v8, %v1238_v44  ;;  %v1062_v45 = vpop.f32.mrf.mxu1 }
 0x12b   :  { %v1957_v54 = vmul.u32.u64.low %v1928_v63, %v1166_v51  ;;  %v1958_v55 = vmul.u32.u64.high %v1928_v63, %v1166_v51, %v1957_v54  ;;  %v1961_v56 = vmul.u32.u64.low %v1928_v63, %v1162_v50  ;;  %v1962_v57 = vmul.u32.u64.high %v1928_v63, %v1162_v50, %v1961_v56 }
 0x12c   :  { %v1243_v5 = vshll.u32 %v1760_v8, %v1237_v34  ;;  %v1244_v59 = vshrl.u32 %v1761_v11, %v1238_v44  ;;  %v1246_v7 = vshll.u32 %v1761_v11, %v1237_v34  ;;  %v1247_v10 = vshrl.u32 %v1762_v2, %v1238_v44 }
 0x12d   :  { %v1249_v13 = vshll.u32 %v1762_v2, %v1237_v34  ;;  %v1250_v15 = vshrl.u32 %v1763_v16, %v1238_v44  ;;  %v1242_v17 = vor.u32 %v1241_v4, %v1240_v53  ;;  %v1252_v19 = vshll.u32 %v1763_v16, %v1237_v34 }
 0x12e   :  { %v1245_v18 = vor.u32 %v1244_v59, %v1243_v5  ;;  %v1253_v63 = vshrl.u32 %v1764_v23, %v1238_v44  ;;  %vm1176_vm7 = vc.u32 %v1958_v55, %v1961_v56  ;;  %v1177_v20 = vadd.s32 1, %v1962_v57 }
 0x12f   :  { %v1239_v21 = vshrl.u32 %v1759_v0, %v1238_v44  ;;  %v1248_v22 = vor.u32 %v1247_v10, %v1246_v7  ;;  %v1251_v24 = vor.u32 %v1250_v15, %v1249_v13  ;;  %vm1255_vm8 = vcmp.lt.s32.totalorder %v1236_v52, 1 }
 0x130   :  { %v1254_v25 = vor.u32 %v1253_v63, %v1252_v19  ;;  %vm1256_vm9 = vcmp.lt.s32.totalorder %v1236_v52, 2  ;;  %v1178_v28 = vsel %vm1176_vm7, %v1177_v20, %v1962_v57  ;;  %vm1257_vm10 = vcmp.lt.s32.totalorder %v1236_v52, 3 }
 0x131   :  { %vm1258_vm11 = vcmp.lt.s32.totalorder %v1236_v52, 4  ;;  %v1263_v29 = vsel %vm1255_vm8, %v1242_v17, %v1245_v18  ;;  %v1179_v31 = vadd.s32 %v1178_v28, %v1174_v60  ;;  %v1267_v35 = vsel %vm1255_vm8, %v1245_v18, %v1248_v22 }
 0x132   :  { %v1260_v33 = vsel %vm1258_vm11, %v1248_v22, 2102212464  ;;  %v1264_v34 = vsel %vm1258_vm11, %v1251_v24, 920167782  ;;  %v1259_v36 = vsel %vm1255_vm8, %v1239_v21, %v1242_v17  ;;  %v1268_v39 = vsel %vm1258_vm11, %v1254_v25, 1326507024 }
 0x133   :  { %v1265_v37 = vsel %vm1257_vm10, %v1248_v22, %v1264_v34  ;;  %v1061_v40 = vadd.f32 %v1060_v26, %v1932_v3  ;;  %v1180_v41 = vadd.s32 536870912, %v1179_v31  ;;  %v1261_v42 = vsel %vm1257_vm10, %v1245_v18, %v1260_v33 }
 0x134   :  { %v1266_v43 = vsel %vm1256_vm9, %v1263_v29, %v1265_v37  ;;  %v1269_v44 = vsel %vm1257_vm10, %v1251_v24, %v1268_v39  ;;  %v1082_v51 = vrot.slane %v1891_v9, %v1926_v62  ;;  %v1262_v60 = vsel %vm1256_vm9, %v1259_v36, %v1261_v42 }
 0x135   :  { %v1270_v46 = vsel %vm1256_vm9, %v1267_v35, %v1269_v44  ;;  %v1984_v48 = vmul.u32.u64.low %v1930_v1, %v1266_v43  ;;  %v1985_v50 = vmul.u32.u64.high %v1930_v1, %v1266_v43, %v1984_v48  ;;  %v1181_v53 = vshrl.u32 %v1180_v41, 30 }
 0x136   :  { %v1990_v54 = vmul.u32.u64.low %v1930_v1, %v1270_v46  ;;  %v1991_v57 = vmul.u32.u64.high %v1930_v1, %v1270_v46, %v1990_v54  ;;  %v1089_v3 = vmul.f32 %v1078_v58, %v1061_v40  ;;  %v1063_v4 = vadd.f32 %v1062_v45, %v987_v49 }
 0x137   :  { %v1108_v5 = vrot.slane %v1898_v14, %v1926_v62  ;;  %v1182_v59 = vshll.u32 %v1181_v53, 30  ;;  %v1281_v10 = vadd.s32 1, %v1985_v50  ;;  %v1278_v17 = vmul.u32 %v1930_v1, %v1262_v60 }
 0x138   :  { %v2002_v7 = vadd.f32 %v1104_v61, %v1089_v3  ;;  %v1090_v13 = vmul.f32 %v1082_v51, %v1063_v4  ;;  %vm1280_vm12 = vc.u32 %v1991_v57, %v1984_v48  ;;  %v1205_v33 = vsub.s32 4, %v1181_v53 }
 0x139   :  { %v1183_v15 = vsub.s32 %v1179_v31, %v1182_v59  ;;  %v1282_v58 = vsel %vm1280_vm12, %v1281_v10, %v1985_v50  ;;  %v1175_v37 = vadd.s32 %v1961_v56, %v1958_v55  ;;  %v1279_v39 = vadd.s32 %v1984_v48, %v1991_v57 }
 0x13a   :  { %v1327_v9 = vand.u32 2147483647, %v2002_v7  ;;  %v1330_v49 = vand.u32 2139095040, %v2002_v7  ;;  %v2010_v52 = vadd.f32 %v1108_v5, %v1090_v13  ;;  %v1283_v14 = vadd.s32 %v1282_v58, %v1278_v17 }
 0x13b   :  { %v1185_v18 = vsub.s32 0, %v1183_v15  ;;  %v2033_v46 = vsel %vm1121_vm13, %v1205_v33, %v1181_v53  ;;  %vm1225_vm6 = vcmp.lt.s32.totalorder %v1912_v32, 0  ;;  %vm2074_vm7 = vcmp.le.f32.partialorder %v1119_v30, 0.7853982 }
 0x13c   :  { %v1331_v61 = vshrl.u32 %v1330_v49, 23  ;;  %v1334_v19 = vand.u32 8388607, %v1327_v9  ;;  %v1434_v63 = vand.u32 2139095040, %v2010_v52  ;;  %v1284_v1 = vadd.s32 536870912, %v1283_v14 }
 0x13d   :  { %v1582_v20 = vmin.u32 %v1185_v18, %v1183_v15  ;;  %v1431_v21 = vand.u32 2147483647, %v2010_v52  ;;  %vm2101_vm12 = vcmp.le.f32.partialorder %v1223_v38, 0.7853982 }
 0x13e   :  { %v1589_v22 = vadd.s32 4294967169, %v1331_v61  ;;  %v1435_v24 = vshrl.u32 %v1434_v63, 23  ;;  %v2016_v26 = vshrl.u32 %v1284_v1, 30  ;;  %v1335_v28 = vor.u32 8388608, %v1334_v19 }
 0x13f   :  { %v1187_v25 = vclz %v1582_v20  ;;  %v2021_v36 = vand.u32 8388607, %v1431_v21 }
 0x140   :  { %v1337_v29 = vadd.s32 1, %v1589_v22  ;;  %v1593_v31 = vadd.s32 4294967169, %v1435_v24  ;;  %v1286_v35 = vshll.u32 %v2016_v26, 30  ;;  %v2029_v45 = vshll.u32 %v1335_v28, 8 }
 0x141   :  { %v1583_v34 = vadd.s32 4294967294, %v1187_v25  ;;  %v1439_v56 = vor.u32 8388608, %v2021_v36 }
 0x142   :  { %vm1338_vm14 = vcmp.gt.s32.totalorder %v1337_v29, 0  ;;  %v2027_v40 = vsub.s32 %v1283_v14, %v1286_v35  ;;  %v1441_v42 = vadd.s32 1, %v1593_v31 }
 0x143   :  { %vm1584_vm15 = vcmp.lt.s32.totalorder %v1583_v34, 0  ;;  %v1339_v41 = vsel %vm1338_vm14, %v1337_v29, 0  ;;  %v2087_v30 = vshll.u32 %v1439_v56, 8 }
 0x144   :  { %v1190_v43 = vsel %vm1584_vm15, 0, %v1583_v34  ;;  %v1341_v44 = vand.u32 31, %v1339_v41  ;;  %v1289_v55 = vsub.s32 0, %v2027_v40  ;;  %v1340_v54 = vshrl.u32 %v1339_v41, 5 }
 0x145   :  { %v1191_v50 = vsub.s32 32, %v1190_v43  ;;  %v1195_v51 = vsub.s32 4294967266, %v1190_v43  ;;  %v1192_v48 = vshll.u32 %v1183_v15, %v1190_v43  ;;  %vm1442_vm0 = vcmp.gt.s32.totalorder %v1441_v42, 0 }
 0x146   :  { %v1342_v57 = vsub.s32 32, %v1341_v44  ;;  %v1344_v3 = vshll.u32 %v1759_v0, %v1341_v44  ;;  %v1586_v5 = vmin.u32 %v1289_v55, %v2027_v40  ;;  %v1347_v59 = vshll.u32 %v1760_v8, %v1341_v44 }
 0x147   :  { %v1193_v60 = vshrl.u32 %v1175_v37, %v1191_v50  ;;  %v1196_v4 = vadd.s32 127, %v1195_v51  ;;  %v1350_v13 = vshll.u32 %v1761_v11, %v1341_v44  ;;  %v1353_v63 = vshll.u32 %v1762_v2, %v1341_v44 }
 0x148   :  { %v1345_v53 = vshrl.u32 %v1760_v8, %v1342_v57  ;;  %v1348_v10 = vshrl.u32 %v1761_v11, %v1342_v57  ;;  %v1351_v17 = vshrl.u32 %v1762_v2, %v1342_v57  ;;  %v1291_v49 = vclz %v1586_v5 }
 0x149   :  { %v1194_v15 = vor.u32 %v1193_v60, %v1192_v48  ;;  %v1197_v58 = vshll.u32 %v1196_v4, 23  ;;  %v1354_v18 = vshrl.u32 %v1763_v16, %v1342_v57  ;;  %v1343_v14 = vshrl.u32 %v1759_v0, %v1342_v57 }
 0x14a   :  { %v1346_v61 = vor.u32 %v1345_v53, %v1344_v3  ;;  %v1352_v19 = vor.u32 %v1351_v17, %v1350_v13  ;;  %v1587_v1 = vadd.s32 4294967294, %v1291_v49  ;;  %v1349_v22 = vor.u32 %v1348_v10, %v1347_v59 }
 0x14b   :  { %v1198_v20 = vor.u32 4788187, %v1197_v58  ;;  %v1356_v24 = vshll.u32 %v1763_v16, %v1341_v44  ;;  %v1201_v25 = vcvt.s32.f32 %v1194_v15  ;;  %v1355_v28 = vor.u32 %v1354_v18, %v1353_v63 }
 0x14c   :  { %v1357_v29 = vshrl.u32 %v1764_v23, %v1342_v57  ;;  %vm1359_vm1 = vcmp.lt.s32.totalorder %v1340_v54, 1  ;;  %vm1588_vm2 = vcmp.lt.s32.totalorder %v1587_v1, 0  ;;  %vm1360_vm3 = vcmp.lt.s32.totalorder %v1340_v54, 2 }
 0x14d   :  { %v1199_v31 = vand.u32 2147483647, %v1198_v20  ;;  %vm1362_vm4 = vcmp.lt.s32.totalorder %v1340_v54, 4  ;;  %v1294_v33 = vsel %vm1588_vm2, 0, %v1587_v1  ;;  %vm1361_vm5 = vcmp.lt.s32.totalorder %v1340_v54, 3 }
 0x14e   :  { %v1358_v34 = vor.u32 %v1357_v29, %v1356_v24  ;;  %v1364_v35 = vsel %vm1362_vm4, %v1352_v19, 2102212464  ;;  %v1295_v41 = vsub.s32 32, %v1294_v33  ;;  %v1299_v43 = vsub.s32 4294967266, %v1294_v33 }
 0x14f   :  { %v1202_v37 = vmul.f32 %v1201_v25, %v1199_v31  ;;  %v1363_v50 = vsel %vm1359_vm1, %v1343_v14, %v1346_v61  ;;  %v1365_v44 = vsel %vm1361_vm5, %v1349_v22, %v1364_v35  ;;  %v1367_v51 = vsel %vm1359_vm1, %v1346_v61, %v1349_v22 }
 0x150   :  { %v1368_v55 = vsel %vm1362_vm4, %v1355_v28, 920167782  ;;  %v1372_v48 = vsel %vm1362_vm4, %v1358_v34, 1326507024  ;;  %v1296_v57 = vshll.u32 %v2027_v40, %v1294_v33  ;;  %v1297_v3 = vshrl.u32 %v1279_v39, %v1295_v41 }
 0x151   :  { %v1300_v60 = vadd.s32 127, %v1299_v43  ;;  %v1371_v4 = vsel %vm1359_vm1, %v1349_v22, %v1352_v19  ;;  %v1203_v5 = vxor.u32 2147483648, %v1202_v37  ;;  %v1369_v59 = vsel %vm1361_vm5, %v1352_v19, %v1368_v55 }
 0x152   :  { %v1373_v53 = vsel %vm1361_vm5, %v1355_v28, %v1372_v48  ;;  %v1443_v10 = vsel %vm1442_vm0, %v1441_v42, 0  ;;  %v1298_v13 = vor.u32 %v1297_v3, %v1296_v57  ;;  %v1366_v15 = vsel %vm1360_vm3, %v1363_v50, %v1365_v44 }
 0x153   :  { %v1301_v17 = vshll.u32 %v1300_v60, 23  ;;  %v1370_v58 = vsel %vm1360_vm3, %v1367_v51, %v1369_v59  ;;  %v1374_v49 = vsel %vm1360_vm3, %v1371_v4, %v1373_v53  ;;  %v2065_v18 = vshrl.u32 %v1443_v10, 5 }
 0x154   :  { %v2061_v39 = vmul.u32.u64.low %v2029_v45, %v1370_v58  ;;  %v2062_v40 = vmul.u32.u64.high %v2029_v45, %v1370_v58, %v2061_v39  ;;  %v2069_v42 = vmul.u32.u64.low %v2029_v45, %v1374_v49  ;;  %v2070_v61 = vmul.u32.u64.high %v2029_v45, %v1374_v49, %v2069_v42 }
 0x155   :  { %v1302_v14 = vor.u32 4788187, %v1301_v17  ;;  %v1204_v54 = vsel %vm1121_vm13, %v1203_v5, %v1202_v37  ;;  %v1445_v63 = vand.u32 31, %v1443_v10  ;;  %v1208_v20 = vsel %vm2074_vm7, 0, %v2033_v46 }
 0x156   :  { %v1309_v1 = vsub.s32 4, %v2016_v26  ;;  %v1305_v24 = vcvt.s32.f32 %v1298_v13  ;;  %v1382_v25 = vmul.u32 %v2029_v45, %v1366_v15  ;;  %v1385_v28 = vadd.s32 1, %v2062_v40 }
 0x157   :  { %v1303_v22 = vand.u32 2147483647, %v1302_v14  ;;  %v1446_v29 = vsub.s32 32, %v1445_v63  ;;  %vm1463_vm8 = vcmp.lt.s32.totalorder %v2065_v18, 1  ;;  %vm1466_vm9 = vcmp.lt.s32.totalorder %v2065_v18, 4 }
 0x158   :  { %vm1384_vm10 = vc.u32 %v2070_v61, %v2061_v39  ;;  %v1448_v46 = vshll.u32 %v1759_v0, %v1445_v63  ;;  %vm1464_vm11 = vcmp.lt.s32.totalorder %v2065_v18, 2  ;;  %v1207_v36 = vsel %vm2074_vm7, %v1908_v27, %v1204_v54 }
 0x159   :  { %v1306_v31 = vmul.f32 %v1305_v24, %v1303_v22  ;;  %v1386_v56 = vsel %vm1384_vm10, %v1385_v28, %v2062_v40  ;;  %v1449_v33 = vshrl.u32 %v1760_v8, %v1446_v29  ;;  %v1451_v34 = vshll.u32 %v1760_v8, %v1445_v63 }
 0x15a   :  { %v1452_v35 = vshrl.u32 %v1761_v11, %v1446_v29  ;;  %v1387_v41 = vadd.s32 %v1386_v56, %v1382_v25  ;;  %v1454_v43 = vshll.u32 %v1761_v11, %v1445_v63  ;;  %v1455_v50 = vshrl.u32 %v1762_v2, %v1446_v29 }
 0x15b   :  { %v1307_v37 = vxor.u32 2147483648, %v1306_v31  ;;  %v1450_v44 = vor.u32 %v1449_v33, %v1448_v46  ;;  %v1457_v38 = vshll.u32 %v1762_v2, %v1445_v63  ;;  %v1458_v55 = vshrl.u32 %v1763_v16, %v1446_v29 }
 0x15c   :  { %v1453_v51 = vor.u32 %v1452_v35, %v1451_v34  ;;  %v1388_v48 = vadd.s32 536870912, %v1387_v41  ;;  %v1456_v57 = vor.u32 %v1455_v50, %v1454_v43  ;;  %v1460_v3 = vshll.u32 %v1763_v16, %v1445_v63  ;;  %v1117_v63 = vld [vmem:[#allocation8] sm:$0xf] }
 0x15d   :  { %v1461_v8 = vshrl.u32 %v1764_v23, %v1446_v29  ;;  %v1308_v60 = vsel %vm1225_vm6, %v1307_v37, %v1306_v31  ;;  %v1447_v4 = vshrl.u32 %v1759_v0, %v1446_v29  ;;  %v1459_v11 = vor.u32 %v1458_v55, %v1457_v38 }
 0x15e   :  { %1628 = vcosq.f32 %v1207_v36  ;;  %v2118_v5 = vshrl.u32 %v1388_v48, 30  ;;  %v1468_v2 = vsel %vm1466_vm9, %v1456_v57, 2102212464  ;;  %v1471_v53 = vsel %vm1463_vm8, %v1450_v44, %v1453_v51 }
 0x15f   :  { %v1462_v59 = vor.u32 %v1461_v8, %v1460_v3  ;;  %vm1465_vm13 = vcmp.lt.s32.totalorder %v2065_v18, 3  ;;  %v1472_v16 = vsel %vm1466_vm9, %v1459_v11, 920167782  ;;  %v1475_v23 = vsel %vm1463_vm8, %v1453_v51, %v1456_v57 }
 0x160   :  { %1630 = vsinq.f32 %v1207_v36  ;;  %v1390_v0 = vshll.u32 %v2118_v5, 30  ;;  %v1467_v10 = vsel %vm1463_vm8, %v1447_v4, %v1450_v44  ;;  %v1473_v13 = vsel %vm1465_vm13, %v1456_v57, %v1472_v16 }
 0x161   :  { %v1476_v17 = vsel %vm1466_vm9, %v1462_v59, 1326507024  ;;  %v1469_v15 = vsel %vm1465_vm13, %v1453_v51, %v1468_v2  ;;  %v1474_v58 = vsel %vm1464_vm11, %v1471_v53, %v1473_v13  ;;  %v1311_v40 = vsel %vm2101_vm12, %v1912_v32, %v1308_v60 }
 0x162   :  { %v1477_v49 = vsel %vm1465_vm13, %v1459_v11, %v1476_v17  ;;  %v1391_v14 = vsub.s32 %v1387_v41, %v1390_v0  ;;  %v2142_v19 = vmul.u32.u64.low %v2087_v30, %v1474_v58  ;;  %v2143_v54 = vmul.u32.u64.high %v2087_v30, %v1474_v58, %v2142_v19 }
 0x163   :  { %v1478_v42 = vsel %vm1464_vm11, %v1475_v23, %v1477_v49  ;;  %v1212_v25 = vadd.s32 3, %v1208_v20  ;;  %1632 = vcosq.f32 %v1311_v40  ;;  %v1470_v29 = vsel %vm1464_vm11, %v1467_v10, %v1469_v15 }
 0x164   :  { %v2147_v22 = vmul.u32.u64.low %v2087_v30, %v1478_v42  ;;  %v2148_v24 = vmul.u32.u64.high %v2087_v30, %v1478_v42, %v2147_v22  ;;  %v1393_v28 = vsub.s32 0, %v1391_v14  ;;  %v1310_v31 = vsel %vm1225_vm6, %v1309_v1, %v2016_v26 }
 0x165   :  { %1634 = vsinq.f32 %v1311_v40  ;;  %vm1118_vm14 = vcmp.ne.s32.totalorder %v1117_v63, 0  ;;  %v1489_v36 = vadd.s32 1, %v2143_v54  ;;  %v1486_v56 = vmul.u32 %v2087_v30, %v1470_v29 }
 0x166   :  { %v1590_v46 = vmin.u32 %v1393_v28, %v1391_v14  ;;  %vm1488_vm15 = vc.u32 %v2148_v24, %v2142_v19  ;;  %v1312_v18 = vsel %vm2101_vm12, 0, %v1310_v31  ;;  %v1213_v34 = vand.u32 3, %v1212_v25 }
 0x167   :  { %v1490_v33 = vsel %vm1488_vm15, %v1489_v36, %v2143_v54  ;;  %v1765_v35 = vmov 0   ;;  %v1316_v43 = vadd.s32 3, %v1312_v18  ;;  %vm1211_vm0 = vweird.f32 %v1908_v27 }
 0x168   :  { %v1395_v20 = vclz %v1590_v46  ;;  %v2164_v37 = vsel %vm1118_vm14, 1, %v1765_v35  ;;  %v1491_v26 = vadd.s32 %v1490_v33, %v1486_v56  ;;  %vm1215_vm2 = vcmp.eq.s32.totalorder %v1213_v34, 0 }
 0x169   :  { %v1539_v44 = vrot.slane %v2164_v37, %v1889_v6  ;;  %vm1218_vm3 = vcmp.eq.s32.totalorder %v1213_v34, 2  ;;  %v1543_v51 = vrot.slane %v2164_v37, %v1893_v12  ;;  %v1383_v3 = vadd.s32 %v2061_v39, %v2070_v61 }
 0x16a   :  { %v1591_v41 = vadd.s32 4294967294, %v1395_v20  ;;  %v1492_v50 = vadd.s32 536870912, %v1491_v26  ;;  %v1317_v4 = vand.u32 3, %v1316_v43  ;;  %vm1214_vm4 = vcmp.lt.s32.totalorder %v1213_v34, 2 }
 0x16b   :  { %v1629_v1 = vpop.eup %1628  ;;  %vm2176_vm5 = vcmp.eq.s32.totalorder %v1539_v44, 1  ;;  %vm1553_vm9 = vcmp.eq.s32.totalorder %v1543_v51, 1  ;;  %vm1315_vm10 = vweird.f32 %v1912_v32  ;;  %vm1329_vm11 = vcmp.lt.s32.totalorder %v2002_v7, 0 }
 0x16c   :  { %v1219_v30 = vxor.u32 2147483648, %v1629_v1  ;;  %vm1592_vm1 = vcmp.lt.s32.totalorder %v1591_v41, 0  ;;  %v2171_v55 = vshrl.u32 %v1492_v50, 30  ;;  %vm1322_vm6 = vcmp.eq.s32.totalorder %v1317_v4, 2 }
 0x16d   :  { %v1631_v45 = vpop.eup %1630  ;;  %v1398_v38 = vsel %vm1592_vm1, 0, %v1591_v41  ;;  %vm1319_vm7 = vcmp.eq.s32.totalorder %v1317_v4, 0  ;;  %vm1318_vm8 = vcmp.lt.s32.totalorder %v1317_v4, 2  ;;  %vm2191_vm13 = vcmp.le.f32.partialorder %v1327_v9, 0.7853982 }
 0x16e   :  { %v1216_v48 = vxor.u32 2147483648, %v1631_v45  ;;  %v1220_v57 = vsel %vm1218_vm3, %v1219_v30, %v1631_v45  ;;  %v1399_v8 = vsub.s32 32, %v1398_v38  ;;  %v1403_v60 = vsub.s32 4294967266, %v1398_v38 }
 0x16f   :  { %v1494_v6 = vshll.u32 %v2171_v55, 30  ;;  %v1400_v2 = vshll.u32 %v1391_v14, %v1398_v38  ;;  %vm1433_vm14 = vcmp.lt.s32.totalorder %v2010_v52, 0  ;;  %vm2207_vm15 = vcmp.le.f32.partialorder %v1431_v21, 0.7853982 }
 0x170   :  { %v1217_v11 = vsel %vm1215_vm2, %v1629_v1, %v1216_v48  ;;  %v1633_v12 = vpop.eup %1632  ;;  %v1401_v53 = vshrl.u32 %v1383_v3, %v1399_v8  ;;  %v1404_v16 = vadd.s32 127, %v1403_v60  ;;  %v1547_v4 = vrot.slane %v2164_v37, %v1920_v47 }
 0x171   :  { %v1221_v23 = vsel %vm1214_vm4, %v1217_v11, %v1220_v57  ;;  %v1495_v10 = vsub.s32 %v1491_v26, %v1494_v6  ;;  %v1323_v61 = vxor.u32 2147483648, %v1633_v12  ;;  %vm1419_vm4 = vweird.f32 %v2002_v7 }
 0x172   :  { %v1635_v0 = vpop.eup %1634  ;;  %v1222_v39 = vsel %vm1211_vm0, nan, %v1221_v23  ;;  %v1402_v13 = vor.u32 %v1401_v53, %v1400_v2  ;;  %v1405_v17 = vshll.u32 %v1404_v16, 23  ;;  %vm1554_vm3 = vcmp.eq.s32.totalorder %v1547_v4, 1 }
 0x173   :  { %v1320_v15 = vxor.u32 2147483648, %v1635_v0  ;;  %v1497_v58 = vsub.s32 0, %v1495_v10  ;;  %v1324_v49 = vsel %vm1322_vm6, %v1323_v61, %v1635_v0  ;;  %v1556_v40 = vsel %vm2176_vm5, %v1222_v39, %v1908_v27 }
 0x174   :  { %v1406_v14 = vor.u32 4788187, %v1405_v17  ;;  %1560 = vst [vmem:[#allocation10] sm:$0xff] %v1556_v40  ;;  %v1409_v25 = vcvt.s32.f32 %v1402_v13  ;;  %v1413_v27 = vsub.s32 4, %v2118_v5 }
 0x175   :  { %v1321_v42 = vsel %vm1319_vm7, %v1633_v12, %v1320_v15  ;;  %v1594_v54 = vmin.u32 %v1497_v58, %v1495_v10 }
 0x176   :  { %v1325_v63 = vsel %vm1318_vm8, %v1321_v42, %v1324_v49  ;;  %v1407_v22 = vand.u32 2147483647, %v1406_v14  ;;  %v1414_v1 = vsel %vm1329_vm11, %v1413_v27, %v2118_v5  ;;  %v1517_v5 = vsub.s32 4, %v2171_v55 }
 0x177   :  { %v1326_v28 = vsel %vm1315_vm10, nan, %v1325_v63  ;;  %v1499_v29 = vclz %v1594_v54  ;;  %v1416_v44 = vsel %vm2191_vm13, 0, %v1414_v1 }
 0x178   :  { %v1557_v31 = vsel %vm1553_vm9, %v1326_v28, %v1912_v32  ;;  %v1410_v46 = vmul.f32 %v1409_v25, %v1407_v22  ;;  %v1487_v32 = vadd.s32 %v2142_v19, %v2148_v24  ;;  %v1420_v51 = vadd.s32 3, %v1416_v44 }
 0x179   :  { %1561 = vst [vmem:[#allocation10 + $0x8] sm:$0xff] %v1557_v31  ;;  %v1595_v36 = vadd.s32 4294967294, %v1499_v29  ;;  %v1518_v53 = vsel %vm1433_vm14, %v1517_v5, %v2171_v55  ;;  %v1551_v55 = vrot.slane %v2164_v37, %v1926_v62  ;;  %vm1523_vm9 = vweird.f32 %v2010_v52 }
 0x17a   :  { %v1411_v56 = vxor.u32 2147483648, %v1410_v46  ;;  %v1421_v57 = vand.u32 3, %v1420_v51  ;;  %v1520_v23 = vsel %vm2207_vm15, 0, %v1518_v53 }
 0x17b   :  { %vm1596_vm12 = vcmp.lt.s32.totalorder %v1595_v36, 0  ;;  %vm1555_vm8 = vcmp.eq.s32.totalorder %v1551_v55, 1 }
 0x17c   :  { %v1412_v18 = vsel %vm1329_vm11, %v1411_v56, %v1410_v46  ;;  %v1502_v20 = vsel %vm1596_vm12, 0, %v1595_v36  ;;  %vm1426_vm0 = vcmp.eq.s32.totalorder %v1421_v57, 2  ;;  %vm1423_vm1 = vcmp.eq.s32.totalorder %v1421_v57, 0 }
 0x17d   :  { %v1503_v34 = vsub.s32 32, %v1502_v20  ;;  %v1507_v35 = vsub.s32 4294967266, %v1502_v20  ;;  %v1415_v26 = vsel %vm2191_vm13, %v2002_v7, %v1412_v18  ;;  %v1504_v41 = vshll.u32 %v1495_v10, %v1502_v20 }
 0x17e   :  { %1636 = vcosq.f32 %v1415_v26  ;;  %vm1422_vm2 = vcmp.lt.s32.totalorder %v1421_v57, 2  ;;  %v1524_v10 = vadd.s32 3, %v1520_v23 }
 0x17f   :  { %v1505_v43 = vshrl.u32 %v1487_v32, %v1503_v34  ;;  %v1508_v50 = vadd.s32 127, %v1507_v35  ;;  %1638 = vsinq.f32 %v1415_v26 }
 0x180   :  { %v1525_v39 = vand.u32 3, %v1524_v10 }
 0x181   :  { %v1506_v9 = vor.u32 %v1505_v43, %v1504_v41  ;;  %v1509_v30 = vshll.u32 %v1508_v50, 23 }
 0x182   :  { %vm1530_vm5 = vcmp.eq.s32.totalorder %v1525_v39, 2  ;;  %vm1527_vm6 = vcmp.eq.s32.totalorder %v1525_v39, 0  ;;  %vm1526_vm7 = vcmp.lt.s32.totalorder %v1525_v39, 2 }
 0x183   :  { %v1510_v45 = vor.u32 4788187, %v1509_v30  ;;  %v1513_v24 = vcvt.s32.f32 %v1506_v9 }
 0x185   :  { %v1511_v19 = vand.u32 2147483647, %v1510_v45 }
 0x187   :  { %v1514_v38 = vmul.f32 %v1513_v24, %v1511_v19 }
 0x189   :  { %v1515_v48 = vxor.u32 2147483648, %v1514_v38 }
 0x18b   :  { %v1637_v3 = vpop.eup %1636  ;;  %v1516_v8 = vsel %vm1433_vm14, %v1515_v48, %v1514_v38 }
 0x18c   :  { %v1639_v6 = vpop.eup %1638  ;;  %v1427_v11 = vxor.u32 2147483648, %v1637_v3  ;;  %v1519_v59 = vsel %vm2207_vm15, %v2010_v52, %v1516_v8 }
 0x18d   :  { %v1424_v12 = vxor.u32 2147483648, %v1639_v6  ;;  %1640 = vcosq.f32 %v1519_v59 }
 0x18e   :  { %v1428_v2 = vsel %vm1426_vm0, %v1427_v11, %v1639_v6  ;;  %1642 = vsinq.f32 %v1519_v59 }
 0x18f   :  { %v1425_v21 = vsel %vm1423_vm1, %v1637_v3, %v1424_v12 }
 0x190   :  { %v1429_v47 = vsel %vm1422_vm2, %v1425_v21, %v1428_v2 }
 0x191   :  { %v1430_v16 = vsel %vm1419_vm4, nan, %v1429_v47 }
 0x192   :  { %v1558_v0 = vsel %vm1554_vm3, %v1430_v16, %v2002_v7 }
 0x193   :  { %1562 = vst [vmem:[#allocation10 + $0x10] sm:$0xff] %v1558_v0 }
 0x19a   :  { %v1641_v61 = vpop.eup %1640 }
 0x19b   :  { %v1643_v13 = vpop.eup %1642  ;;  %v1531_v17 = vxor.u32 2147483648, %v1641_v61 }
 0x19c   :  { %v1528_v15 = vxor.u32 2147483648, %v1643_v13 }
 0x19d   :  { %v1532_v58 = vsel %vm1530_vm5, %v1531_v17, %v1643_v13 }
 0x19e   :  { %v1529_v49 = vsel %vm1527_vm6, %v1641_v61, %v1528_v15 }
 0x19f   :  { %v1533_v7 = vsel %vm1526_vm7, %v1529_v49, %v1532_v58 }
 0x1a0   :  { %v1534_v40 = vsel %vm1523_vm9, nan, %v1533_v7 }
 0x1a1   :  { %v1559_v14 = vsel %vm1555_vm8, %v1534_v40, %v2010_v52 }
 0x1a2   :  { %1563 = vst [vmem:[#allocation10 + $0x18] sm:$0xff] %v1559_v14 }
 0x1a3   :  { %1735 = shalt.err (!%p1732_p10)
}
 0x1a4   :  { %1573 = dma.vmem_to_hbm [thread:$0]  %s1571_s13, 512, %s2233_s5, [#allocation4]  }
 0x1a5   :  { %1750 = dma.done.wait [#allocation4], 512  }
 0x1a6   :  { %1751 = vsyncadd [#allocation4], 4294966784 }
 0x1a7   :  { %1577 = vsyncpa [#allocation3], 1 }
 0x1a8   :  { %1578 = vsyncpa [#allocation6], 1 }
 0x1a9   :  { %1579 = vsyncpa [#allocation9], 1 }
 0x1aa   :  { %1580 = vsyncpa [#allocation4], 1 }

</bundles_post_ra>
